<compile_context>
chip_gen: v5e
topology: v5e:2x2
jax: 0.10.0
libtpu: 0.0.40
codegen_flags: <defaults>
</compile_context>

<pallas_src>
import jax
import jax.numpy as jnp
from jax.experimental import pallas as pl
from jax.experimental.pallas import tpu as pltpu


# --------------------------------------------------------------------------
# Pass 1: SE gate MLP (batched over B).  Whole-array blocks, no grid — the
# operands (pooled (B,T), fc weights) are small relative to VMEM.
# --------------------------------------------------------------------------
def _se_gate_kernel(pooled_ref, w1t_ref, w2t_ref, y_ref):
    h = jnp.dot(pooled_ref[...], w1t_ref[...],
                preferred_element_type=jnp.float32)          # (B, H)
    h = jnp.maximum(h, 0.0)                                  # ReLU
    y = jnp.dot(h, w2t_ref[...],
                preferred_element_type=jnp.float32)          # (B, T)
    y_ref[...] = jax.nn.sigmoid(y).astype(y_ref.dtype)       # Sigmoid


def _se_gate(pooled, w1t, w2t):
    B, T = pooled.shape
    return pl.pallas_call(
        _se_gate_kernel,
        out_shape=jax.ShapeDtypeStruct((B, T), jnp.float32),
        compiler_params=pltpu.CompilerParams(
            vmem_limit_bytes=32 * 1024 * 1024),
    )(pooled, w1t, w2t)


# --------------------------------------------------------------------------
# Pass 2: streaming x * gate + channel LayerNorm, tiled over (B, T).
# --------------------------------------------------------------------------
def _scale_ln_kernel(x_ref, y_ref, g_ref, b_ref, o_ref):
    """x_ref: (1, C, tT), y_ref: (1, 1, tT), g/b: (C, 1), o_ref: (1, C, tT)."""
    x = x_ref[0]                                   # (C, tT)
    y = y_ref[0]                                   # (1, tT)
    C = x.shape[0]

    xs = x * y                                     # gated features

    # One-pass LayerNorm statistics over the channel axis.
    inv_c = 1.0 / C
    s = jnp.sum(xs, axis=0, keepdims=True)         # (1, tT)
    ss = jnp.sum(xs * xs, axis=0, keepdims=True)   # (1, tT)
    mu = s * inv_c
    var = ss * inv_c - mu * mu

    scale = g_ref[...] * jax.lax.rsqrt(var + 1e-5)             # (C, tT)
    o_ref[0] = ((xs - mu) * scale + b_ref[...]).astype(o_ref.dtype)


def _choose_block_t(T, max_block=1024):
    """Largest multiple of 128 that divides T (<= max_block); else full T."""
    if T % 128 != 0:
        return T
    best = 128
    cand = 128
    while cand <= min(T, max_block):
        if T % cand == 0:
            best = cand
        cand += 128
    return best


@jax.jit
def _run_level(x, w1t, w2t, g2, b2):
    """x: (B, C, T); w1t: (T, H); w2t: (H, T); g2/b2: (C, 1)."""
    B, C, T = x.shape

    # ---- Pass 1: gate (pooling in XLA, MLP on the MXU, batched over B) ----
    pooled = jnp.mean(x.astype(jnp.float32), axis=1)           # (B, T)
    gate = _se_gate(pooled, w1t, w2t).reshape(B, 1, T)         # (B, 1, T)

    # ---- Pass 2: streaming gate-apply + LayerNorm over C ----
    block_t = _choose_block_t(T)
    grid = (B, T // block_t)
    return pl.pallas_call(
        _scale_ln_kernel,
        out_shape=jax.ShapeDtypeStruct((B, C, T), x.dtype),
        grid_spec=pltpu.PrefetchScalarGridSpec(
            num_scalar_prefetch=0,
            grid=grid,
            in_specs=[
                pl.BlockSpec((1, C, block_t), lambda b, t: (b, 0, t)),
                pl.BlockSpec((1, 1, block_t), lambda b, t: (b, 0, t)),
                pl.BlockSpec((C, 1), lambda b, t: (0, 0)),
                pl.BlockSpec((C, 1), lambda b, t: (0, 0)),
            ],
            out_specs=pl.BlockSpec((1, C, block_t), lambda b, t: (b, 0, t)),
        ),
        compiler_params=pltpu.CompilerParams(
            dimension_semantics=("parallel", "parallel"),
            vmem_limit_bytes=32 * 1024 * 1024),
    )(x, gate, g2, b2)


# --------------------------------------------------------------------------
# Module-level glue
# --------------------------------------------------------------------------
def make_params(key, in_channels, out_channel, times, ratio=8):
    """Synthetic parameters in PyTorch layout (shapes follow module __init__)."""
    params = []
    for lvl, t in enumerate(times):
        c = in_channels[lvl]
        assert c == out_channel
        hid = t // ratio
        key, k1, k2 = jax.random.split(key, 3)
        w1 = 0.1 * jax.random.normal(k1, (hid, t), jnp.float32)   # Linear(t -> t/ratio)
        w2 = 0.1 * jax.random.normal(k2, (t, hid), jnp.float32)   # Linear(t/ratio -> t)
        gamma = jnp.ones((c,), jnp.float32)                       # LayerNorm weight
        beta = jnp.zeros((c,), jnp.float32)                       # LayerNorm bias
        params.append((w1, w2, gamma, beta))
    return params


def prepare_params(params):
    """One-time layout prep: pre-transpose fc weights, reshape affine to (C,1)."""
    prepped = []
    for (w1, w2, gamma, beta) in params:
        prepped.append((
            jnp.asarray(w1).T,                 # (T, H)
            jnp.asarray(w2).T,                 # (H, T)
            jnp.asarray(gamma).reshape(-1, 1),  # (C, 1)
            jnp.asarray(beta).reshape(-1, 1),   # (C, 1)
        ))
    return prepped


def fpn_identity_forward(inputs, fpn_masks, prepared_params, start_level=0):
    """Mirrors FPNIdentity.forward: returns (fpn_feats, new_fpn_masks)."""
    assert len(inputs) == len(fpn_masks)
    fpn_feats = []
    new_masks = []
    for i, (w1t, w2t, g2, b2) in enumerate(prepared_params):
        x = inputs[i + start_level]
        # TODO(synk): se_block `t > self.t` interpolate branch not implemented.
        fpn_feats.append(_run_level(x, w1t, w2t, g2, b2))
        new_masks.append(fpn_masks[i + start_level])
    return tuple(fpn_feats), tuple(new_masks)


# --------------------------------------------------------------------------
# Pure-JAX reference (for correctness validation)
# --------------------------------------------------------------------------
def _ref_level(x, w1, w2, gamma, beta):
    pooled = jnp.mean(x, axis=1)                               # (B, T)
    h = jax.nn.relu(pooled @ w1.T)                             # (B, H)
    y = jax.nn.sigmoid(h @ w2.T)                               # (B, T)
    xs = x * y[:, None, :]
    mu = jnp.mean(xs, axis=1, keepdims=True)
    var = jnp.mean((xs - mu) ** 2, axis=1, keepdims=True)
    out = (xs - mu) * jax.lax.rsqrt(var + 1e-5)
    return out * gamma[None, :, None] + beta[None, :, None]


if __name__ == "__main__":
    # Small synthetic config: 2 pyramid levels, C = out_channel = 4,
    # temporal lengths T = [16, 8] (stand-ins for 2304 // 2**level).
    B = 2
    C = 4
    in_channels = [C, C]
    out_channel = C
    times = [16, 8]

    key = jax.random.PRNGKey(0)
    key, kx0, kx1 = jax.random.split(key, 3)
    inputs = (
        jax.random.normal(kx0, (B, C, times[0]), jnp.float32),
        jax.random.normal(kx1, (B, C, times[1]), jnp.float32),
    )
    fpn_masks = (
        jnp.ones((B, 1, times[0]), jnp.bool_),
        jnp.ones((B, 1, times[1]), jnp.bool_),
    )

    params = make_params(key, in_channels, out_channel, times, ratio=8)
    prepared = prepare_params(params)

    feats, masks = fpn_identity_forward(inputs, fpn_masks, prepared)
    for f in feats:
        jax.block_until_ready(f)

    # sanity: shapes preserved per level, masks passed through
    assert all(f.shape == x.shape for f, x in zip(feats, inputs))
    assert all(m.shape == fm.shape for m, fm in zip(masks, fpn_masks))

    # correctness vs pure-JAX reference
    for lvl, (f, x, p) in enumerate(zip(feats, inputs, params)):
        ref = _ref_level(x, *p)
        assert jnp.allclose(f, ref, atol=1e-4, rtol=1e-4), f"level {lvl} mismatch"

    print("KERNEL_OK")
</pallas_src>

<mosaic_0001>
module attributes {stable_mosaic.version = 11 : i64} {
  func.func @_se_gate_kernel(%arg0: memref<2x16xf32, #tpu.memory_space<vmem>>, %arg1: memref<16x2xf32, #tpu.memory_space<vmem>>, %arg2: memref<2x16xf32, #tpu.memory_space<vmem>>, %arg3: memref<2x16xf32, #tpu.memory_space<vmem>>) attributes {dimension_semantics = [], scalar_prefetch = 0 : i64, scratch_operands = 0 : i64, tpu.core_type = #tpu.core_type<tc>} {
    %c0 = arith.constant 0 : index
    %c0_0 = arith.constant 0 : index
    %0 = vector.load %arg0[%c0, %c0_0] : memref<2x16xf32, #tpu.memory_space<vmem>>, vector<2x16xf32>
    %c0_1 = arith.constant 0 : index
    %c0_2 = arith.constant 0 : index
    %1 = vector.load %arg1[%c0_1, %c0_2] : memref<16x2xf32, #tpu.memory_space<vmem>>, vector<16x2xf32>
    %cst = arith.constant dense<0.000000e+00> : vector<2x2xf32>
    %2 = tpu.matmul %0, %1, %cst {dimension_numbers = #tpu.dot_dimension_numbers<[1], [0], [0], [1], [0, 0, 1, 1], [], []>} : vector<2x16xf32>, vector<16x2xf32>, vector<2x2xf32> -> vector<2x2xf32>
    %cst_3 = arith.constant 0.000000e+00 : f32
    %3 = vector.broadcast %cst_3 : f32 to vector<2x2xf32>
    %4 = arith.maximumf %2, %3 : vector<2x2xf32>
    %c0_4 = arith.constant 0 : index
    %c0_5 = arith.constant 0 : index
    %5 = vector.load %arg2[%c0_4, %c0_5] : memref<2x16xf32, #tpu.memory_space<vmem>>, vector<2x16xf32>
    %cst_6 = arith.constant dense<0.000000e+00> : vector<2x16xf32>
    %6 = tpu.matmul %4, %5, %cst_6 {dimension_numbers = #tpu.dot_dimension_numbers<[1], [0], [0], [1], [0, 0, 1, 1], [], []>} : vector<2x2xf32>, vector<2x16xf32>, vector<2x16xf32> -> vector<2x16xf32>
    %7 = arith.negf %6 : vector<2x16xf32>
    %8 = math.exp %7 : vector<2x16xf32>
    %cst_7 = arith.constant 1.000000e+00 : f32
    %9 = vector.broadcast %cst_7 : f32 to vector<2x16xf32>
    %10 = arith.addf %9, %8 : vector<2x16xf32>
    %11 = arith.divf %9, %10 : vector<2x16xf32>
    %c0_8 = arith.constant 0 : index
    %c0_9 = arith.constant 0 : index
    %12 = vector.load %arg3[%c0_8, %c0_9] : memref<2x16xf32, #tpu.memory_space<vmem>>, vector<2x16xf32>
    tpu.vector_store %arg3[%c0_8, %c0_9], %11 {strides = array<i32>} : memref<2x16xf32, #tpu.memory_space<vmem>>, vector<2x16xf32>,
    return
  }
}

module attributes {stable_mosaic.version = 11 : i64} {
  func.func @_scale_ln_kernel(%arg0: i32, %arg1: i32, %arg2: memref<1x4x16xf32, #tpu.memory_space<vmem>>, %arg3: memref<1x1x16xf32, #tpu.memory_space<vmem>>, %arg4: memref<4x1xf32, #tpu.memory_space<vmem>>, %arg5: memref<4x1xf32, #tpu.memory_space<vmem>>, %arg6: memref<1x4x16xf32, #tpu.memory_space<vmem>>) attributes {dimension_semantics = [#tpu.dimension_semantics<parallel>, #tpu.dimension_semantics<parallel>], iteration_bounds = array<i64: 2, 1>, scalar_prefetch = 0 : i64, scratch_operands = 0 : i64, tpu.core_type = #tpu.core_type<tc>, window_params = [{transform_indices = @transform_0, window_bounds = array<i64: 1, 4, 16>}, {transform_indices = @transform_1, window_bounds = array<i64: 1, 1, 16>}, {pipeline_mode = #tpu.pipeline_mode<synchronous>, transform_indices = @transform_2, window_bounds = array<i64: 4, 1>}, {pipeline_mode = #tpu.pipeline_mode<synchronous>, transform_indices = @transform_3, window_bounds = array<i64: 4, 1>}, {transform_indices = @transform_4, window_bounds = array<i64: 1, 4, 16>}]} {
    %c0 = arith.constant 0 : index
    %c0_0 = arith.constant 0 : index
    %c0_1 = arith.constant 0 : index
    %0 = vector.load %arg2[%c0, %c0_0, %c0_1] : memref<1x4x16xf32, #tpu.memory_space<vmem>>, vector<1x4x16xf32>
    %1 = vector.shape_cast %0 : vector<1x4x16xf32> to vector<4x16xf32>
    %c0_2 = arith.constant 0 : index
    %c0_3 = arith.constant 0 : index
    %c0_4 = arith.constant 0 : index
    %2 = vector.load %arg3[%c0_2, %c0_3, %c0_4] : memref<1x1x16xf32, #tpu.memory_space<vmem>>, vector<1x1x16xf32>
    %3 = vector.shape_cast %2 : vector<1x1x16xf32> to vector<1x16xf32>
    %4 = vector.broadcast %3 : vector<1x16xf32> to vector<4x16xf32>
    %5 = arith.mulf %1, %4 : vector<4x16xf32>
    %cst = arith.constant dense<0.000000e+00> : vector<16xf32>
    %6 = vector.multi_reduction <add>, %5, %cst [0] : vector<4x16xf32> to vector<16xf32>
    %7 = vector.shape_cast %6 : vector<16xf32> to vector<1x16xf32>
    %8 = arith.mulf %5, %5 : vector<4x16xf32>
    %cst_5 = arith.constant dense<0.000000e+00> : vector<16xf32>
    %9 = vector.multi_reduction <add>, %8, %cst_5 [0] : vector<4x16xf32> to vector<16xf32>
    %10 = vector.shape_cast %9 : vector<16xf32> to vector<1x16xf32>
    %cst_6 = arith.constant 2.500000e-01 : f32
    %11 = vector.broadcast %cst_6 : f32 to vector<1x16xf32>
    %12 = arith.mulf %7, %11 : vector<1x16xf32>
    %cst_7 = arith.constant 2.500000e-01 : f32
    %13 = vector.broadcast %cst_7 : f32 to vector<1x16xf32>
    %14 = arith.mulf %10, %13 : vector<1x16xf32>
    %15 = arith.mulf %12, %12 : vector<1x16xf32>
    %16 = arith.subf %14, %15 : vector<1x16xf32>
    %c0_8 = arith.constant 0 : index
    %c0_9 = arith.constant 0 : index
    %17 = vector.load %arg4[%c0_8, %c0_9] : memref<4x1xf32, #tpu.memory_space<vmem>>, vector<4x1xf32>
    %cst_10 = arith.constant 9.99999974E-6 : f32
    %18 = vector.broadcast %cst_10 : f32 to vector<1x16xf32>
    %19 = arith.addf %16, %18 : vector<1x16xf32>
    %20 = math.rsqrt %19 : vector<1x16xf32>
    %21 = vector.broadcast %17 : vector<4x1xf32> to vector<4x16xf32>
    %22 = vector.broadcast %20 : vector<1x16xf32> to vector<4x16xf32>
    %23 = arith.mulf %21, %22 : vector<4x16xf32>
    %24 = vector.broadcast %12 : vector<1x16xf32> to vector<4x16xf32>
    %25 = arith.subf %5, %24 : vector<4x16xf32>
    %26 = arith.mulf %25, %23 : vector<4x16xf32>
    %c0_11 = arith.constant 0 : index
    %c0_12 = arith.constant 0 : index
    %27 = vector.load %arg5[%c0_11, %c0_12] : memref<4x1xf32, #tpu.memory_space<vmem>>, vector<4x1xf32>
    %28 = vector.broadcast %27 : vector<4x1xf32> to vector<4x16xf32>
    %29 = arith.addf %26, %28 : vector<4x16xf32>
    %c0_13 = arith.constant 0 : index
    %c0_14 = arith.constant 0 : index
    %c0_15 = arith.constant 0 : index
    %30 = vector.load %arg6[%c0_13, %c0_14, %c0_15] : memref<1x4x16xf32, #tpu.memory_space<vmem>>, vector<1x4x16xf32>
    %31 = vector.shape_cast %30 : vector<1x4x16xf32> to vector<4x16xf32>
    %32 = vector.shape_cast %29 : vector<4x16xf32> to vector<1x4x16xf32>
    tpu.vector_store %arg6[%c0_13, %c0_14, %c0_15], %32 {strides = array<i32>} : memref<1x4x16xf32, #tpu.memory_space<vmem>>, vector<1x4x16xf32>,
    return
  }
  func.func @transform_0(%arg0: i32, %arg1: i32) -> (i32, i32, i32) {
    %c0_i32 = arith.constant 0 : i32
    %c0_i32_0 = arith.constant 0 : i32
    return %arg0, %c0_i32, %arg1 : i32, i32, i32
  }
  func.func @transform_1(%arg0: i32, %arg1: i32) -> (i32, i32, i32) {
    %c0_i32 = arith.constant 0 : i32
    %c0_i32_0 = arith.constant 0 : i32
    return %arg0, %c0_i32, %arg1 : i32, i32, i32
  }
  func.func @transform_2(%arg0: i32, %arg1: i32) -> (i32, i32) {
    %c0_i32 = arith.constant 0 : i32
    %c0_i32_0 = arith.constant 0 : i32
    %c0_i32_1 = arith.constant 0 : i32
    return %c0_i32, %c0_i32_0 : i32, i32
  }
  func.func @transform_3(%arg0: i32, %arg1: i32) -> (i32, i32) {
    %c0_i32 = arith.constant 0 : i32
    %c0_i32_0 = arith.constant 0 : i32
    %c0_i32_1 = arith.constant 0 : i32
    return %c0_i32, %c0_i32_0 : i32, i32
  }
  func.func @transform_4(%arg0: i32, %arg1: i32) -> (i32, i32, i32) {
    %c0_i32 = arith.constant 0 : i32
    %c0_i32_0 = arith.constant 0 : i32
    return %arg0, %c0_i32, %arg1 : i32, i32, i32
  }
}

</mosaic_0001>

<bundles_post_ra>
// kernel: _run_level.2
= control target key start
LH: loop header
LB: loop body
LE: loop exit
PB: predicated region body
PF: predicated region fallthrough
CT: control target
= control target key end

     0   :  { %vm17_vm0 = vcmask 130048   ;;  %vm47_vm1 = vcmask 1041408   ;;  %vm43_vm2 = vcmask 15360   ;;  %vm90_vm6 = vcmask 123904   ;;  %s139_s1 = inlined_call_operand.vmem [shape: f32[16,2], index: 1, kind: input, shape index: {}]   ;;  %s140_s0 = inlined_call_operand.vmem [shape: f32[2,16], index: 0, kind: input, shape index: {}]   ;;  %s141_s2 = inlined_call_operand.vmem [shape: f32[2,16], index: 2, kind: input, shape index: {}]   ;;  %s142_s3 = inlined_call_operand.vmem [shape: f32[2,16], index: 3, kind: output, shape index: {}]  }
   0x1   :  { %v16_v0 = vld [vmem:[%s139_s1 + $0x8] sm:$0xff]  ;;  %v15_v1 = vld [vmem:[%s139_s1] sm:$0xff] }
   0x2   :  { %35 = vmatpush.msra.mxu0 %v16_v0  ;;  %v14_v2 = vld [vmem:[%s140_s0] sm:$0x3] }
   0x3   :  { %v42_v3 = vld [vmem:[%s141_s2] sm:$0x3] }
   0x4   :  { %36 = vmatpush.msra.mxu0 %v15_v1  ;;  %97 = vmatpush.msk.msra.mxu1 %vm47_vm1, %v42_v3 }
   0x5   :  { %96 = vmatmul.msk.f32.vlgmr.msra.gmra.mxu0 %vm17_vm0, %v14_v2 }
  0x82   :  { %v38_v4 = vpop.f32.mrf.mxu0 }
  0x83   :  { %v41_v5 = vmax.f32 %v38_v4, 0.0 }
  0x85   :  { %98 = vmatmul.msk.f32.vlgmr.msra.gmra.mxu1 %vm43_vm2, %v41_v5 }
 0x102   :  { %v68_v6 = vpop.f32.mrf.mxu1 }
 0x103   :  { %v99_v7 = vmul.f32 -1.442695, %v68_v6 }
 0x105   :  { %100 = vpow2.f32 %v99_v7 }
 0x10b   :  { %v101_v8 = vpop.eup %100 }
 0x10c   :  { %v74_v9 = vadd.f32 1.0, %v101_v8 }
 0x10e   :  { %102 = vrcp.f32 %v74_v9  ;;  %v86_v13 = vand.u32 2147483648, %v74_v9  ;;  %v84_v15 = vand.u32 2147483647, %v74_v9  ;;  %vm80_vm4 = vweird.f32 %v74_v9 }
 0x110   :  { %v87_v17 = vor.u32 1.1754944e-38, %v86_v13  ;;  %vm85_vm7 = vcmp.eq.f32.partialorder %v84_v15, 8.507059e+37 }
 0x114   :  { %v103_v10 = vpop.eup %102 }
 0x115   :  { %v76_v11 = vmul.f32 %v103_v10, %v74_v9  ;;  %vm81_vm3 = vweird.f32 %v103_v10 }
 0x116   :  { %vm82_vm5 = vmor %vm80_vm4, %vm81_vm3 }
 0x117   :  { %v77_v12 = vsub.f32 1.0, %v76_v11 }
 0x119   :  { %v78_v14 = vmul.f32 %v103_v10, %v77_v12 }
 0x11b   :  { %v79_v16 = vadd.f32 %v103_v10, %v78_v14 }
 0x11d   :  { %v83_v18 = vsel %vm82_vm5, %v103_v10, %v79_v16 }
 0x11e   :  { %v88_v19 = vsel %vm85_vm7, %v87_v17, %v83_v18 }
 0x11f   :  { %91 = vst.msk [vmem:[%s142_s3] sm:$0x3] %vm90_vm6, %v88_v19 }

// kernel: _run_level.3
= control target key start
LH: loop header
LB: loop body
LE: loop exit
PB: predicated region body
PF: predicated region fallthrough
CT: control target
= control target key end

     0   :  { %9 = vsyncpa [#allocation3], 0  ;;  %s683_s0 = inlined_call_operand.vmem [shape: f32[2,4,16], index: 0, kind: input, shape index: {}]   ;;  %s684_s1 = inlined_call_operand.vmem [shape: f32[2,1,16], index: 1, kind: input, shape index: {}]   ;;  %s685_s2 = inlined_call_operand.vmem [shape: f32[4,1], index: 2, kind: input, shape index: {}]   ;;  %s686_s3 = inlined_call_operand.vmem [shape: f32[4,1], index: 3, kind: input, shape index: {}]   ;;  %s687_s4 = inlined_call_operand.hbm [shape: f32[2,4,16], index: 4, kind: output, shape index: {}]  }
   0x1   :  { %11 = vsyncpa [#allocation3 + $0x1], 0  ;;  %s574_s15 = smov 0   ;;  %s576_s16 = smov 0  }
   0x2   :  { %s578_s17 = smov 0   ;;  %s580_s18 = smov 0  }
   0x3   :  { %s582_s19 = smov 0   ;;  %s584_s20 = smov 0  }
   0x4 LB: > { %s397_s21 = sadd.s32 4294967295, %s546_s20   ;;  %s398_s22 = sadd.s32 4294967294, %s546_s20   ;;  %s546_s20 = sphi %s584_s20, %s17_s20   ;;  %s542_s19 = sphi %s582_s19, %s694_s19   ;;  %s538_s18 = sphi %s580_s18, %s693_s18   ;;  %s534_s17 = sphi %s578_s17, %s692_s17   ;;  %s530_s16 = sphi %s576_s16, %s691_s16   ;;  %s526_s15 = sphi %s574_s15, %s690_s15  }
   0x5   : > { %s29_s23 = sadd.s32 1, %s542_s19  ;;  %s136_s24 = sadd.s32 1, %s534_s17 }
   0x6   : > { %p31_p0 = scmp.ge.s32.totalorder %s29_s23, 2  ;;  %p146_p1 = scmp.ne.s32.totalorder %s534_s17, %s530_s16 }
   0x7   : > { %p147_p2 = scmp.eq.s32.totalorder %s397_s21, 1  ;;  %p152_p3 = scmp.ne.s32.totalorder %s530_s16, %s526_s15 }
   0x8   : > { %s696_s23 = smov (%p31_p0, %s29_s23), 0  ;;  %p153_p5 = scmp.eq.s32.totalorder %s398_s22, 1 }
   0x9   : > { %p614_p4 = por %p147_p2, %p146_p1  ;;  %s131_s26 = ssub.s32 %s542_s19, %s696_s23 }
   0xa   : > { %p401_p6 = scmp.ge.s32.totalorder %s546_s20, 1  ;;  %p134_p7 = scmp.eq.s32.totalorder %s131_s26, 0 }
   0xb   : > { %p621_p8 = por %p153_p5, %p152_p3  ;;  %p196_p9 = scmp.lt.s32.totalorder %s546_s20, 3 }
   0xc   : > { %s627_s28 = scalar_select %p134_p7, %s534_s17, %s136_s24  }
   0xd   : > { %p197_p10 = pnand %p401_p6, %p196_p9 }
   0xe   : > { %p230_p11 = scmp.lt.s32.totalorder (!%p197_p10), %s538_s18, 1  ;;  %s227_s21 = sand.u32 (!%p197_p10), 1, %s530_s16  }
   0xf   : > { %200 = sbr.rel (%p197_p10) target bundleno = 150 (0x96), region = 36  ;;  %s402_s22 = sshll.u32 (!%p197_p10), %s227_s21, 2 }
  0x10   : > { %s405_s24 = sshll.u32 (!%p197_p10), %s538_s18, 2  ;;  %s488_s12 = scalar_lea.hbm (!%p197_p10), %s687_s4, 8 }
  0x11   : > { %s309_s30 = scalar_lea.hbm (!%p197_p10), %s687_s4, %s405_s24 }
  0x12   : > { %s313_s7 = sshll.u32 (!%p197_p10), %s309_s30, 4  ;;  %s314_s7 = int_to_ptr.hbm [resolvable:$true] %s313_s7 }
  0x13   : > { %s482_s9 = sshra.s32 (!%p197_p10), %s314_s7, 4  ;;  %s483_s9 = int_to_ptr.hbm [resolvable:$true] %s482_s9 }
  0x14   : > { %v269_v0 = vld [vmem:[%s685_s2] sm:$0xf]  ;;  %v548_v1 = vmov 0   ;;  %s231_s5 = scalar_select %p230_p11, %s538_s18, 1  ;;  %vm249_vm0 = vcmask 125952  }
  0x15   : > { %464 = vset.pattern.permute.xlu0 %v548_v1  ;;  %v289_v2 = vld [vmem:[%s686_s3] sm:$0xf]  ;;  %s484_s18 = scalar_lea.hbm %s483_s9, 4  ;;  %p489_p1 = scmp.lt.s32.totalorder %s483_s9, %s687_s4 }
  0x16   : > { %283 = vperm.xlu0 %464, %v269_v0   ;;  %s242_s8 = scalar_lea.vmem %s684_s1, %s231_s5  ;;  %s403_s11 = sshll.u32 %s231_s5, 2 }
  0x17   : > { %s236_s14 = scalar_lea.vmem %s683_s0, %s403_s11  ;;  %v465_v3 = vld [vmem:[%s242_s8] ss:$0 sm:$0xff]  ;;  %s229_s5 = scalar_lea.vmem [#allocation2], %s402_s22 }
  0x18   : > { %v243_v4 = vld [vmem:[%s236_s14] sm:$0xf]  ;;  %s311_s6 = sshll.u32 %s229_s5, 4  ;;  %s298_s8 = scalar_lea.sflag [#allocation3], %s227_s21  ;;  %s312_s6 = int_to_ptr.vmem [resolvable:$true] %s311_s6 }
  0x19   : > { %v248_v5 = vmul.f32 %v465_v3, %v243_v4  ;;  %p485_p12 = scmp.ne.s32.totalorder %s483_s9, %s484_s18  ;;  %p490_p2 = scmp.lt.s32.totalorder %s488_s12, %s484_s18 }
  0x1b   : > { %v250_v6 = vsel %vm249_vm0, %v248_v5, 0.0  ;;  %v257_v7 = vmul.f32 %v248_v5, %v248_v5  ;;  %p486_p13 = pnand %p485_p12, %p614_p4  ;;  %p491_p3 = por %p490_p2, %p489_p1 }
  0x1c   : > { %v251_v8 = vrot.slane %v250_v6, 4 }
  0x1d   : > { %v258_v9 = vsel %vm249_vm0, %v257_v7, 0.0  ;;  %p487_p0 = pneg %p486_p13 }
  0x1e   : > { %292 = vperm.xlu0 %464, %v289_v2   ;;  %v252_v10 = vadd.f32 %v251_v8, %v250_v6  ;;  %v259_v11 = vrot.slane %v258_v9, 4 }
  0x1f   : > { %p492_p5 = pnand %p491_p3, %p487_p0 }
  0x20   : > { %v253_v12 = vrot.slane %v252_v10, 2  ;;  %v260_v13 = vadd.f32 %v259_v11, %v258_v9 }
  0x22   : > { %v254_v14 = vadd.f32 %v253_v12, %v252_v10  ;;  %v261_v15 = vrot.slane %v260_v13, 2 }
  0x24   : > { %v255_v16 = vrot.slane %v254_v14, 1  ;;  %v262_v17 = vadd.f32 %v261_v15, %v260_v13 }
  0x26   : > { %v256_v18 = vadd.f32 %v255_v16, %v254_v14  ;;  %v263_v19 = vrot.slane %v262_v17, 1 }
  0x28   : > { %v264_v20 = vadd.f32 %v263_v19, %v262_v17  ;;  %v265_v21 = vmul.f32 0.25, %v256_v18 }
  0x2a   : > { %v266_v22 = vmul.f32 0.25, %v264_v20  ;;  %v267_v23 = vmul.f32 %v265_v21, %v265_v21  ;;  %v287_v35 = vsub.f32 %v248_v5, %v265_v21 }
  0x2c   : > { %v268_v24 = vsub.f32 %v266_v22, %v267_v23 }
  0x2e   : > { %v270_v25 = vadd.f32 1e-05, %v268_v24 }
  0x30   : > { %466 = vrsqrt.f32 %v270_v25  ;;  %vm277_vm1 = vweird.f32 %v270_v25 }
  0x36   : > { %v467_v26 = vpop.eup %466 }
  0x37   : > { %v272_v27 = vmul.f32 %v467_v26, %v270_v25  ;;  %vm278_vm2 = vweird.f32 %v467_v26 }
  0x38   : > { %vm279_vm3 = vmor %vm277_vm1, %vm278_vm2 }
  0x39   : > { %v273_v28 = vmul.f32 %v467_v26, %v272_v27 }
  0x3b   : > { %v274_v29 = vmul.f32 0.5, %v273_v28 }
  0x3d   : > { %v275_v30 = vsub.f32 1.5, %v274_v29 }
  0x3f   : > { %v276_v31 = vmul.f32 %v467_v26, %v275_v30 }
  0x41   : > { %v280_v33 = vsel %vm279_vm3, %v467_v26, %v276_v31 }
  0x88   : > { %v284_v32 = vpop.permute.xlu0 %283 }
  0x89   : > { %v286_v34 = vmul.f32 %v284_v32, %v280_v33 }
  0x8b   : > { %v288_v36 = vmul.f32 %v287_v35, %v286_v34 }
  0x90   : > { %v293_v37 = vpop.permute.xlu0 %292 }
  0x91   : > { %v295_v38 = vadd.f32 %v293_v37, %v288_v36 }
  0x93   : > { %296 = vst.msk [vmem:[%s229_s5] sm:$0xf] %vm249_vm0, %v295_v38 }
  0x94   : > { %495 = shalt.err (!%p492_p5)
}
  0x95   : > { %408 = dma.vmem_to_hbm [thread:$0]  (%p614_p4), %s312_s6, 64, %s314_s7, %s298_s8  }
  0x96 PF: > { %p414_p6 = scmp.ge.s32.totalorder %s546_s20, 2  ;;  %s325_s21 = sand.u32 1, %s526_s15  }
  0x97   : > { %s326_s22 = scalar_lea.sflag [#allocation3], %s325_s21 }
  0x98   : > { %p411_p7 = pnand %p414_p6, %p621_p8 }
  0x9a   : > { %p412_p9 = pneg %p411_p7 }
  0x9c   : > { %521 = dma.done.wait (%p412_p9), %s326_s22, 64  }
  0x9d   : > { %523 = vsyncadd (%p412_p9), %s326_s22, 4294967232  ;;  %s17_s20 = sadd.s32 1, %s546_s20   ;;  %s690_s15 = smov %s530_s16 }
  0x9e   : > { %p14_p10 = scmp.ge.s32.totalorder %s17_s20, 4   ;;  %s691_s16 = smov %s534_s17 }
  0x9f   : > { %s692_s17 = smov %s627_s28  ;;  %s693_s18 = smov %s542_s19 }
  0xa0   : > { %s694_s19 = smov %s696_s23  ;;  %16 = sbr.rel (!%p14_p10) target bundleno = 4 (0x4), region = 74 }
  0xa5   :  { %332 = vsyncpa [#allocation3], 1 }
  0xa6   :  { %334 = vsyncpa [#allocation3 + $0x1], 1 }

</bundles_post_ra>
